<compile_context>
chip_gen: v7x
topology: tpu7x:2x2x1
jax: 0.10.0
libtpu: 0.0.40
codegen_flags: <defaults>
</compile_context>

<pallas_src>
import functools

import jax
import jax.numpy as jnp
from jax.experimental import pallas as pl
from jax.experimental.pallas import tpu as pltpu


def _round_up(x, m):
    return (x + m - 1) // m * m


def _ce_label_smooth_kernel(
    targets_ref,    # (TB, 1) int32
    inputs_ref,     # (TB, TC) logits
    out_ref,        # (1, 8, 128) f32 per-batch-tile partial loss (lane dense)
    m_ref,          # (TB, 1) f32 running max
    l_ref,          # (TB, 1) f32 running sum(exp(x - m))
    sx_ref,         # (TB, 1) f32 running sum of valid logits
    xt_ref,         # (TB, 1) f32 logit at the target class
    *,
    epsilon,
    num_classes,    # true (unpadded) C
    batch,          # true (unpadded) B
    tb,
    tc,
):
    bi = pl.program_id(0)
    ci = pl.program_id(1)

    @pl.when(ci == 0)
    def _init():
        m_ref[...] = jnp.full_like(m_ref, -jnp.inf)
        l_ref[...] = jnp.zeros_like(l_ref)
        sx_ref[...] = jnp.zeros_like(sx_ref)
        xt_ref[...] = jnp.zeros_like(xt_ref)

    x = inputs_ref[...].astype(jnp.float32)                       # (TB, TC)

    # Global class indices for this tile (computed once per tile).
    col = ci * tc + jax.lax.broadcasted_iota(jnp.int32, (tb, tc), 1)
    valid = col < num_classes                                     # pad-column mask

    # --- online softmax statistics (max / sum-exp), padding masked to -inf ---
    x_m = jnp.where(valid, x, -jnp.inf)
    m_prev = m_ref[...]
    m_new = jnp.maximum(m_prev, jnp.max(x_m, axis=-1, keepdims=True))
    l_ref[...] = (l_ref[...] * jnp.exp(m_prev - m_new)
                  + jnp.sum(jnp.exp(x_m - m_new), axis=-1, keepdims=True))
    m_ref[...] = m_new

    # --- plain sums needed for the smoothed CE (no rescaling required) ---
    sx_ref[...] += jnp.sum(jnp.where(valid, x, 0.0), axis=-1, keepdims=True)
    tgt = targets_ref[...]                                        # (TB, 1)
    xt_ref[...] += jnp.sum(jnp.where(col == tgt, x, 0.0), axis=-1, keepdims=True)

    @pl.when(ci == pl.num_programs(1) - 1)
    def _finalize():
        lse = m_ref[...] + jnp.log(l_ref[...])                    # (TB, 1)
        row_loss = ((1.0 - epsilon) * (lse - xt_ref[...])
                    + (epsilon / num_classes) * (num_classes * lse - sx_ref[...]))
        # Mask padded batch rows.
        row = bi * tb + jax.lax.broadcasted_iota(jnp.int32, (tb, 1), 0)
        row_loss = jnp.where(row < batch, row_loss, 0.0)
        partial = jnp.sum(row_loss)
        # Lane-dense unmasked store; wrapper reads [:, 0, 0].
        out_ref[...] = jnp.full(out_ref.shape, partial, dtype=out_ref.dtype)


def cross_entropy_with_label_smooth(inputs, targets, epsilon=0.1,
                                    block_b=256, block_c=2048):
    """inputs: (B, C) float logits; targets: (B,) int labels. Returns scalar f32."""
    B, C = inputs.shape

    # Sublane/lane-aligned tile sizes (bf16 prefers 16 sublanes, f32 needs 8).
    sub = 16 if inputs.dtype == jnp.bfloat16 else 8
    tb = min(block_b, _round_up(B, sub))
    tc = min(block_c, _round_up(C, 128))
    b_pad = _round_up(B, tb)
    c_pad = _round_up(C, tc)

    targets_i32 = targets.astype(jnp.int32)
    if (b_pad, c_pad) != (B, C):
        inputs = jnp.pad(inputs, ((0, b_pad - B), (0, c_pad - C)))
    if b_pad != B:
        targets_i32 = jnp.pad(targets_i32, (0, b_pad - B))
    targets2d = targets_i32.reshape(b_pad, 1)

    nb = b_pad // tb
    nc = c_pad // tc

    kernel = functools.partial(
        _ce_label_smooth_kernel,
        epsilon=float(epsilon), num_classes=int(C), batch=int(B), tb=tb, tc=tc)

    partials = pl.pallas_call(
        kernel,
        out_shape=jax.ShapeDtypeStruct((nb, 8, 128), jnp.float32),
        grid_spec=pltpu.PrefetchScalarGridSpec(
            num_scalar_prefetch=0,
            grid=(nb, nc),                       # class (reduction) axis last
            in_specs=[
                pl.BlockSpec((tb, 1), lambda bi, ci: (bi, 0)),    # targets
                pl.BlockSpec((tb, tc), lambda bi, ci: (bi, ci)),  # logits
            ],
            out_specs=pl.BlockSpec((1, 8, 128), lambda bi, ci: (bi, 0, 0)),
            scratch_shapes=[
                pltpu.VMEM((tb, 1), jnp.float32),   # m
                pltpu.VMEM((tb, 1), jnp.float32),   # l
                pltpu.VMEM((tb, 1), jnp.float32),   # sum_x
                pltpu.VMEM((tb, 1), jnp.float32),   # x_at_target
            ],
        ),
        compiler_params=pltpu.CompilerParams(
            dimension_semantics=("parallel", "arbitrary")),
    )(targets2d, inputs)

    # Sum per-batch-tile partials and apply the mean-over-batch scale once.
    return jnp.sum(partials[:, 0, 0]) / B


if __name__ == "__main__":
    key = jax.random.PRNGKey(0)
    k1, k2 = jax.random.split(key)

    # Small demo shape; deliberately not tile-aligned to exercise the masking.
    batch, num_classes = 6, 160
    inputs = jax.random.normal(k1, (batch, num_classes), dtype=jnp.float32)
    targets = jax.random.randint(k2, (batch,), 0, num_classes, dtype=jnp.int32)

    # Use small blocks so the demo runs a multi-tile grid (2 class tiles).
    loss = cross_entropy_with_label_smooth(inputs, targets, epsilon=0.1,
                                           block_b=8, block_c=128)
    loss = jax.block_until_ready(loss)

    # Pure-JAX reference.
    log_probs = jax.nn.log_softmax(inputs, axis=1)
    onehot = jax.nn.one_hot(targets, num_classes, dtype=jnp.float32)
    smoothed = (1.0 - 0.1) * onehot + 0.1 / num_classes
    ref = jnp.sum(jnp.mean(-smoothed * log_probs, axis=0))
    assert jnp.allclose(loss, ref, rtol=1e-5, atol=1e-5), (loss, ref)

    # Also check the default (single-tile-per-axis) tiling path.
    loss2 = jax.block_until_ready(
        cross_entropy_with_label_smooth(inputs, targets, epsilon=0.1))
    assert jnp.allclose(loss2, ref, rtol=1e-5, atol=1e-5), (loss2, ref)

    print("KERNEL_OK")
</pallas_src>

<mosaic_0001>
module attributes {stable_mosaic.version = 11 : i64} {
  func.func @_ce_label_smooth_kernel(%arg0: i32, %arg1: i32, %arg2: memref<8x1xi32, #tpu.memory_space<vmem>>, %arg3: memref<8x128xf32, #tpu.memory_space<vmem>>, %arg4: memref<1x8x128xf32, #tpu.memory_space<vmem>>, %arg5: memref<8x1xf32, #tpu.memory_space<vmem>>, %arg6: memref<8x1xf32, #tpu.memory_space<vmem>>, %arg7: memref<8x1xf32, #tpu.memory_space<vmem>>, %arg8: memref<8x1xf32, #tpu.memory_space<vmem>>) attributes {dimension_semantics = [#tpu.dimension_semantics<parallel>, #tpu.dimension_semantics<arbitrary>], iteration_bounds = array<i64: 1, 2>, scalar_prefetch = 0 : i64, scratch_operands = 4 : i64, tpu.core_type = #tpu.core_type<tc>, window_params = [{transform_indices = @transform_0, window_bounds = array<i64: 8, 1>}, {transform_indices = @transform_1, window_bounds = array<i64: 8, 128>}, {transform_indices = @transform_2, window_bounds = array<i64: 1, 8, 128>}]} {
    %c0_i32 = arith.constant 0 : i32
    %0 = arith.cmpi eq, %arg1, %c0_i32 : i32
    %1 = arith.extui %0 : i1 to i32
    %c0_i32_0 = arith.constant 0 : i32
    %2 = arith.cmpi ne, %1, %c0_i32_0 : i32
    scf.if %2 {
      %cst_27 = arith.constant 0xFF800000 : f32
      %48 = vector.broadcast %cst_27 : f32 to vector<8x1xf32>
      %c0_28 = arith.constant 0 : index
      %c0_29 = arith.constant 0 : index
      %49 = vector.load %arg5[%c0_28, %c0_29] : memref<8x1xf32, #tpu.memory_space<vmem>>, vector<8x1xf32>
      tpu.vector_store %arg5[%c0_28, %c0_29], %48 {strides = array<i32>} : memref<8x1xf32, #tpu.memory_space<vmem>>, vector<8x1xf32>,
      %cst_30 = arith.constant 0.000000e+00 : f32
      %50 = vector.broadcast %cst_30 : f32 to vector<8x1xf32>
      %c0_31 = arith.constant 0 : index
      %c0_32 = arith.constant 0 : index
      %51 = vector.load %arg6[%c0_31, %c0_32] : memref<8x1xf32, #tpu.memory_space<vmem>>, vector<8x1xf32>
      tpu.vector_store %arg6[%c0_31, %c0_32], %50 {strides = array<i32>} : memref<8x1xf32, #tpu.memory_space<vmem>>, vector<8x1xf32>,
      %cst_33 = arith.constant 0.000000e+00 : f32
      %52 = vector.broadcast %cst_33 : f32 to vector<8x1xf32>
      %c0_34 = arith.constant 0 : index
      %c0_35 = arith.constant 0 : index
      %53 = vector.load %arg7[%c0_34, %c0_35] : memref<8x1xf32, #tpu.memory_space<vmem>>, vector<8x1xf32>
      tpu.vector_store %arg7[%c0_34, %c0_35], %52 {strides = array<i32>} : memref<8x1xf32, #tpu.memory_space<vmem>>, vector<8x1xf32>,
      %cst_36 = arith.constant 0.000000e+00 : f32
      %54 = vector.broadcast %cst_36 : f32 to vector<8x1xf32>
      %c0_37 = arith.constant 0 : index
      %c0_38 = arith.constant 0 : index
      %55 = vector.load %arg8[%c0_37, %c0_38] : memref<8x1xf32, #tpu.memory_space<vmem>>, vector<8x1xf32>
      tpu.vector_store %arg8[%c0_37, %c0_38], %54 {strides = array<i32>} : memref<8x1xf32, #tpu.memory_space<vmem>>, vector<8x1xf32>,
    } else {
    }
    %c0 = arith.constant 0 : index
    %c0_1 = arith.constant 0 : index
    %3 = vector.load %arg3[%c0, %c0_1] : memref<8x128xf32, #tpu.memory_space<vmem>>, vector<8x128xf32>
    %c128_i32 = arith.constant 128 : i32
    %4 = arith.muli %arg1, %c128_i32 : i32
    %5 = tpu.iota {dimensions = array<i32: 1>} : vector<8x128xi32>
    %6 = vector.broadcast %4 : i32 to vector<8x128xi32>
    %7 = arith.addi %6, %5 : vector<8x128xi32>
    %c160_i32 = arith.constant 160 : i32
    %8 = vector.broadcast %c160_i32 : i32 to vector<8x128xi32>
    %9 = arith.cmpi slt, %7, %8 : vector<8x128xi32>
    %cst = arith.constant 0xFF800000 : f32
    %10 = vector.broadcast %cst : f32 to vector<8x128xf32>
    %11 = arith.select %9, %3, %10 : vector<8x128xi1>, vector<8x128xf32>
    %c0_2 = arith.constant 0 : index
    %c0_3 = arith.constant 0 : index
    %12 = vector.load %arg5[%c0_2, %c0_3] : memref<8x1xf32, #tpu.memory_space<vmem>>, vector<8x1xf32>
    %cst_4 = arith.constant dense<0xFF800000> : vector<8xf32>
    %13 = vector.multi_reduction <maximumf>, %11, %cst_4 [1] : vector<8x128xf32> to vector<8xf32>
    %14 = vector.shape_cast %13 : vector<8xf32> to vector<8x1xf32>
    %15 = arith.maximumf %12, %14 : vector<8x1xf32>
    %c0_5 = arith.constant 0 : index
    %c0_6 = arith.constant 0 : index
    %16 = vector.load %arg6[%c0_5, %c0_6] : memref<8x1xf32, #tpu.memory_space<vmem>>, vector<8x1xf32>
    %17 = arith.subf %12, %15 : vector<8x1xf32>
    %18 = math.exp %17 : vector<8x1xf32>
    %19 = arith.mulf %16, %18 : vector<8x1xf32>
    %20 = vector.broadcast %15 : vector<8x1xf32> to vector<8x128xf32>
    %21 = arith.subf %11, %20 : vector<8x128xf32>
    %22 = math.exp %21 : vector<8x128xf32>
    %cst_7 = arith.constant dense<0.000000e+00> : vector<8xf32>
    %23 = vector.multi_reduction <add>, %22, %cst_7 [1] : vector<8x128xf32> to vector<8xf32>
    %24 = vector.shape_cast %23 : vector<8xf32> to vector<8x1xf32>
    %25 = arith.addf %19, %24 : vector<8x1xf32>
    %c0_8 = arith.constant 0 : index
    %c0_9 = arith.constant 0 : index
    %26 = vector.load %arg6[%c0_8, %c0_9] : memref<8x1xf32, #tpu.memory_space<vmem>>, vector<8x1xf32>
    tpu.vector_store %arg6[%c0_8, %c0_9], %25 {strides = array<i32>} : memref<8x1xf32, #tpu.memory_space<vmem>>, vector<8x1xf32>,
    %c0_10 = arith.constant 0 : index
    %c0_11 = arith.constant 0 : index
    %27 = vector.load %arg5[%c0_10, %c0_11] : memref<8x1xf32, #tpu.memory_space<vmem>>, vector<8x1xf32>
    tpu.vector_store %arg5[%c0_10, %c0_11], %15 {strides = array<i32>} : memref<8x1xf32, #tpu.memory_space<vmem>>, vector<8x1xf32>,
    %c0_12 = arith.constant 0 : index
    %c0_13 = arith.constant 0 : index
    %28 = vector.load %arg7[%c0_12, %c0_13] : memref<8x1xf32, #tpu.memory_space<vmem>>, vector<8x1xf32>
    %cst_14 = arith.constant 0.000000e+00 : f32
    %29 = vector.broadcast %cst_14 : f32 to vector<8x128xf32>
    %30 = arith.select %9, %3, %29 : vector<8x128xi1>, vector<8x128xf32>
    %cst_15 = arith.constant dense<0.000000e+00> : vector<8xf32>
    %31 = vector.multi_reduction <add>, %30, %cst_15 [1] : vector<8x128xf32> to vector<8xf32>
    %32 = vector.shape_cast %31 : vector<8xf32> to vector<8x1xf32>
    %33 = arith.addf %28, %32 : vector<8x1xf32>
    %c0_16 = arith.constant 0 : index
    %c0_17 = arith.constant 0 : index
    %34 = vector.load %arg7[%c0_16, %c0_17] : memref<8x1xf32, #tpu.memory_space<vmem>>, vector<8x1xf32>
    tpu.vector_store %arg7[%c0_16, %c0_17], %33 {strides = array<i32>} : memref<8x1xf32, #tpu.memory_space<vmem>>, vector<8x1xf32>,
    %c0_18 = arith.constant 0 : index
    %c0_19 = arith.constant 0 : index
    %35 = vector.load %arg2[%c0_18, %c0_19] : memref<8x1xi32, #tpu.memory_space<vmem>>, vector<8x1xi32>
    %c0_20 = arith.constant 0 : index
    %c0_21 = arith.constant 0 : index
    %36 = vector.load %arg8[%c0_20, %c0_21] : memref<8x1xf32, #tpu.memory_space<vmem>>, vector<8x1xf32>
    %37 = vector.broadcast %35 : vector<8x1xi32> to vector<8x128xi32>
    %38 = arith.cmpi eq, %7, %37 : vector<8x128xi32>
    %cst_22 = arith.constant 0.000000e+00 : f32
    %39 = vector.broadcast %cst_22 : f32 to vector<8x128xf32>
    %40 = arith.select %38, %3, %39 : vector<8x128xi1>, vector<8x128xf32>
    %cst_23 = arith.constant dense<0.000000e+00> : vector<8xf32>
    %41 = vector.multi_reduction <add>, %40, %cst_23 [1] : vector<8x128xf32> to vector<8xf32>
    %42 = vector.shape_cast %41 : vector<8xf32> to vector<8x1xf32>
    %43 = arith.addf %36, %42 : vector<8x1xf32>
    %c0_24 = arith.constant 0 : index
    %c0_25 = arith.constant 0 : index
    %44 = vector.load %arg8[%c0_24, %c0_25] : memref<8x1xf32, #tpu.memory_space<vmem>>, vector<8x1xf32>
    tpu.vector_store %arg8[%c0_24, %c0_25], %43 {strides = array<i32>} : memref<8x1xf32, #tpu.memory_space<vmem>>, vector<8x1xf32>,
    %c1_i32 = arith.constant 1 : i32
    %45 = arith.cmpi eq, %arg1, %c1_i32 : i32
    %46 = arith.extui %45 : i1 to i32
    %c0_i32_26 = arith.constant 0 : i32
    %47 = arith.cmpi ne, %46, %c0_i32_26 : i32
    scf.if %47 {
      %c0_27 = arith.constant 0 : index
      %c0_28 = arith.constant 0 : index
      %48 = vector.load %arg5[%c0_27, %c0_28] : memref<8x1xf32, #tpu.memory_space<vmem>>, vector<8x1xf32>
      %c0_29 = arith.constant 0 : index
      %c0_30 = arith.constant 0 : index
      %49 = vector.load %arg6[%c0_29, %c0_30] : memref<8x1xf32, #tpu.memory_space<vmem>>, vector<8x1xf32>
      %50 = math.log %49 : vector<8x1xf32>
      %51 = arith.addf %48, %50 : vector<8x1xf32>
      %c0_31 = arith.constant 0 : index
      %c0_32 = arith.constant 0 : index
      %52 = vector.load %arg8[%c0_31, %c0_32] : memref<8x1xf32, #tpu.memory_space<vmem>>, vector<8x1xf32>
      %53 = arith.subf %51, %52 : vector<8x1xf32>
      %cst_33 = arith.constant 0.899999976 : f32
      %54 = vector.broadcast %cst_33 : f32 to vector<8x1xf32>
      %55 = arith.mulf %54, %53 : vector<8x1xf32>
      %cst_34 = arith.constant 1.600000e+02 : f32
      %56 = vector.broadcast %cst_34 : f32 to vector<8x1xf32>
      %57 = arith.mulf %56, %51 : vector<8x1xf32>
      %c0_35 = arith.constant 0 : index
      %c0_36 = arith.constant 0 : index
      %58 = vector.load %arg7[%c0_35, %c0_36] : memref<8x1xf32, #tpu.memory_space<vmem>>, vector<8x1xf32>
      %59 = arith.subf %57, %58 : vector<8x1xf32>
      %cst_37 = arith.constant 6.250000e-04 : f32
      %60 = vector.broadcast %cst_37 : f32 to vector<8x1xf32>
      %61 = arith.mulf %60, %59 : vector<8x1xf32>
      %62 = arith.addf %55, %61 : vector<8x1xf32>
      %c8_i32 = arith.constant 8 : i32
      %63 = arith.muli %arg0, %c8_i32 : i32
      %64 = tpu.iota {dimensions = array<i32: 0>} : vector<8x1xi32>
      %65 = vector.broadcast %63 : i32 to vector<8x1xi32>
      %66 = arith.addi %65, %64 : vector<8x1xi32>
      %c6_i32 = arith.constant 6 : i32
      %67 = vector.broadcast %c6_i32 : i32 to vector<8x1xi32>
      %68 = arith.cmpi slt, %66, %67 : vector<8x1xi32>
      %cst_38 = arith.constant 0.000000e+00 : f32
      %69 = vector.broadcast %cst_38 : f32 to vector<8x1xf32>
      %70 = arith.select %68, %62, %69 : vector<8x1xi1>, vector<8x1xf32>
      %71 = vector.shape_cast %70 : vector<8x1xf32> to vector<1x8x1xf32>
      %cst_39 = arith.constant dense<0.000000e+00> : vector<1xf32>
      %72 = vector.multi_reduction <add>, %71, %cst_39 [1, 2] : vector<1x8x1xf32> to vector<1xf32>
      %73 = vector.shape_cast %72 : vector<1xf32> to vector<1x1x1xf32>
      %74 = vector.extract %73[0, 0, 0] : f32 from vector<1x1x1xf32>
      %75 = vector.broadcast %74 : f32 to vector<1x8x128xf32>
      %c0_40 = arith.constant 0 : index
      %c0_41 = arith.constant 0 : index
      %c0_42 = arith.constant 0 : index
      %76 = vector.load %arg4[%c0_40, %c0_41, %c0_42] : memref<1x8x128xf32, #tpu.memory_space<vmem>>, vector<1x8x128xf32>
      tpu.vector_store %arg4[%c0_40, %c0_41, %c0_42], %75 {strides = array<i32>} : memref<1x8x128xf32, #tpu.memory_space<vmem>>, vector<1x8x128xf32>,
    } else {
    }
    return
  }
  func.func @transform_0(%arg0: i32, %arg1: i32) -> (i32, i32) {
    %c0_i32 = arith.constant 0 : i32
    %c0_i32_0 = arith.constant 0 : i32
    return %arg0, %c0_i32 : i32, i32
  }
  func.func @transform_1(%arg0: i32, %arg1: i32) -> (i32, i32) {
    %c0_i32 = arith.constant 0 : i32
    return %arg0, %arg1 : i32, i32
  }
  func.func @transform_2(%arg0: i32, %arg1: i32) -> (i32, i32, i32) {
    %c0_i32 = arith.constant 0 : i32
    %c0_i32_0 = arith.constant 0 : i32
    %c0_i32_1 = arith.constant 0 : i32
    return %arg0, %c0_i32, %c0_i32_0 : i32, i32, i32
  }
}

</mosaic_0001>

<bundles_post_ra>
// kernel: tpu_custom_call.1
= control target key start
LH: loop header
LB: loop body
LE: loop exit
PB: predicated region body
PF: predicated region fallthrough
CT: control target
= control target key end

     0   :  { %7 = vsyncpa [#allocation7], 0  ;;  %s748_s0 = inlined_call_operand.vmem [shape: s32[8,1], index: 0, kind: input, shape index: {}]   ;;  %s749_s1 = inlined_call_operand.hbm [shape: f32[8,256], index: 1, kind: input, shape index: {}]   ;;  %s750_s2 = inlined_call_operand.hbm [shape: f32[1,8,128], index: 2, kind: output, shape index: {}]  }
   0x1   :  { %9 = vsyncpa [#allocation7 + $0x1], 0 }
   0x2   :  { %10 = vsyncpa [#allocation8], 0  ;;  %s587_s9 = smov 0   ;;  %s589_s10 = smov 0  }
   0x3   :  { %s591_s11 = smov 0   ;;  %s593_s12 = smov 0  }
   0x4   :  { %s595_s13 = smov 0   ;;  %s597_s14 = smov 0  }
   0x5 LB: > { %s365_s15 = sadd.s32 4294967295, %s565_s14   ;;  %s25_s16 = sadd.s32 1, %s561_s13  ;;  %s565_s14 = sphi %s597_s14, %s16_s14   ;;  %s561_s13 = sphi %s595_s13, %s761_s13   ;;  %s557_s12 = sphi %s593_s12, %s760_s12   ;;  %s553_s11 = sphi %s591_s11, %s759_s11   ;;  %s549_s10 = sphi %s589_s10, %s758_s10   ;;  %s545_s9 = sphi %s587_s9, %s757_s9  }
   0x6   : > { %p26_p0 = scmp.ge.s32.totalorder %s25_s16, 2  ;;  %s63_s17 = sadd.s32 1, %s553_s11 }
   0x7   : > { %p70_p1 = scmp.ne.s32.totalorder %s553_s11, %s549_s10  ;;  %p71_p2 = scmp.eq.s32.totalorder %s565_s14, 0 }
   0x8   : > { %s763_s16 = smov (%p26_p0, %s25_s16), 0  ;;  %p76_p4 = scmp.ne.s32.totalorder %s549_s10, %s545_s9 }
   0x9   : > { %p623_p3 = por %p71_p2, %p70_p1  ;;  %s59_s19 = ssub.s32 %s561_s13, %s763_s16 }
   0xa   : > { %p77_p5 = scmp.eq.s32.totalorder %s365_s15, 0  ;;  %p61_p6 = scmp.eq.s32.totalorder %s59_s19, 0 }
   0xb   : > { %p392_p8 = scmp.lt.s32.totalorder %s565_s14, 2  ;;  %s133_s22 = sand.u32 1, %s553_s11  }
   0xc   : > { %p632_p7 = por %p77_p5, %p76_p4  ;;  %s370_s23 = sshll.u32 %s561_s13, 7 }
   0xd   : > { %s638_s21 = scalar_select %p61_p6, %s553_s11, %s63_s17  }
   0xe   : > { %s369_s24 = sshll.u32 %s133_s22, 3  ;;  %s645_s27 = scalar_lea.hbm %s749_s1, %s370_s23 }
   0xf   : > { %s137_s28 = scalar_lea.vmem [#allocation6], %s369_s24  ;;  %p649_p9 = pnand %p392_p8, %p623_p3 }
  0x10   : > { %s146_s29 = sshll.u32 %s137_s28, 4  ;;  %s134_s3 = scalar_lea.sflag [#allocation7], %s133_s22  ;;  %s653_s29 = int_to_ptr.vmem [resolvable:$true] %s146_s29 }
  0x11   : > { %s455_s4 = scalar_lea.hbm %s645_s27, 128  ;;  %p457_p13 = pneg %p649_p9 }
  0x12   : > { %p456_p12 = scmp.ne.s32.totalorder %s645_s27, %s455_s4  ;;  %s460_s7 = scalar_lea.hbm %s749_s1, 256 }
  0x13   : > { %p461_p2 = scmp.lt.u32.totalorder %s645_s27, %s749_s1  ;;  %p462_p3 = scmp.lt.u32.totalorder %s460_s7, %s455_s4 }
  0x14   : > { %p458_p0 = pnand %p457_p13, %p456_p12  ;;  %p464_p5 = scmp.lt.u32.totalorder %s455_s4, %s645_s27 }
  0x15   : > { %p463_p4 = por %p462_p3, %p461_p2 }
  0x16   : > { %p459_p1 = pneg %p458_p0 }
  0x17   : > { %p465_p6 = por %p464_p5, %p463_p4 }
  0x19   : > { %p466_p8 = pnand %p465_p6, %p459_p1 }
  0x1b   : > { %469 = shalt.err (!%p466_p8)
}
  0x1c   : > { %s470_s17 = scalar_lea.vmem %s653_s29, 128  ;;  %s567_s18 = smov [#allocation6]  }
  0x1d   : > { %p471_p12 = scmp.ne.s32.totalorder %s653_s29, %s470_s17  ;;  %s475_s19 = sshll.u32 %s567_s18, 4  ;;  %s476_s19 = int_to_ptr.vmem [resolvable:$false] %s475_s19 }
  0x1e   : > { %s477_s22 = scalar_lea.vmem %s476_s19, 256  ;;  %p478_p11 = scmp.lt.s32.totalorder %s653_s29, %s476_s19 }
  0x1f   : > { %p473_p0 = pnand %p471_p12, %p457_p13  ;;  %p479_p2 = scmp.lt.s32.totalorder %s477_s22, %s470_s17 }
  0x21   : > { %p474_p10 = pneg %p473_p0  ;;  %p480_p3 = por %p479_p2, %p478_p11 }
  0x23   : > { %p481_p4 = pnand %p480_p3, %p474_p10 }
  0x25   : > { %484 = shalt.err (!%p481_p4)
}
  0x26   : > { %391 = dma.hbm_to_vmem [thread:$0]  (!%p649_p9), %s645_s27, 128, %s653_s29, %s134_s3  }
  0x27   : > { %p754_p1 = scmp.lt.s32.totalorder %s565_s14, 3  ;;  %p755_p5 = scmp.ge.s32.totalorder %s565_s14, 1 }
  0x29   : > { %p152_p13 = pnand %p755_p5, %p754_p1 }
  0x2a   : > { %s157_s23 = sand.u32 (!%p152_p13), 1, %s549_s10  }
  0x2b   : > { %155 = sbr.rel (%p152_p13) target bundleno = 763 (0x2fb), region = 28  ;;  %s372_s24 = sshll.u32 (!%p152_p13), %s157_s23, 3 }
  0x2c   : > { %s158_s25 = scalar_lea.sflag (!%p152_p13), [#allocation7], %s157_s23  ;;  %s161_s26 = scalar_lea.vmem (!%p152_p13), [#allocation6], %s372_s24 }
  0x32   : > { %536 = dma.done.wait (%p632_p7), %s158_s25, 128  }
  0x33   : > { %538 = vsyncadd (%p632_p7), %s158_s25, 4294967168  ;;  %p373_p10 = scmp.ne.s32.totalorder %s557_s12, 0 }
  0x34   : > { %vm189_vm0 = vcmask (!%p373_p10), 7168   ;;  %v568_v0 = vmov (!%p373_p10), -inf   ;;  %v569_v1 = vmov (!%p373_p10), 0.0  }
  0x35   : > { %188 = sbr.rel (%p373_p10) target bundleno = 60 (0x3c), region = 36  ;;  %190 = vst.msk [vmem:[#allocation2] sm:$0xff] (!%p373_p10), %vm189_vm0, %v568_v0  ;;  %191 = vst.msk [vmem:[#allocation3] sm:$0xff] (!%p373_p10), %vm189_vm0, %v569_v1 }
  0x36   : > { %192 = vst.msk [vmem:[#allocation4] sm:$0xff] (!%p373_p10), %vm189_vm0, %v569_v1  ;;  %193 = vst.msk [vmem:[#allocation5] sm:$0xff] (!%p373_p10), %vm189_vm0, %v569_v1 }
  0x3c PF: > { %s374_s27 = sshll.u32 %s557_s12, 7  ;;  %v196_v2 = vlaneseq  ;;  %v194_v5 = vld [vmem:[%s161_s26] sm:$0xff]  ;;  %v570_v8 = vmov 0   ;;  %vm222_vm2 = vcmask 7168   ;;  %p375_p7 = scmp.ne.s32.totalorder %s557_s12, 1 }
  0x3d   : > { %v198_v3 = vstv %s374_s27  ;;  %447 = vset.pattern.permute.xlu0 %v570_v8  ;;  %448 = vset.pattern.permute.xlu1 %v570_v8  ;;  %v231_v9 = vld [vmem:[%s748_s0] sm:$0xff]  ;;  %v225_v21 = vld [vmem:[#allocation4] sm:$0xff]  ;;  %v206_v26 = vld [vmem:[#allocation3] sm:$0xff] }
  0x3e   : > { %v197_v4 = vand.u32 127, %v196_v2  ;;  %234 = vperm.xlu1 %448, %v231_v9   ;;  %v202_v10 = vld [vmem:[#allocation2] sm:$0xff]  ;;  %v232_v30 = vld [vmem:[#allocation5] sm:$0xff]  ;;  %v261_v42 = vshrl.u32 (!%p375_p7), %v196_v2, 7 }
  0x40   : > { %v199_v6 = vadd.s32 %v198_v3, %v197_v4  ;;  %vm264_vm4 = vcmp.lt.s32.totalorder (!%p375_p7), %v261_v42, 6 }
  0x42   : > { %vm200_vm1 = vcmp.lt.s32.totalorder %v199_v6, 160 }
  0x43   : > { %v201_v7 = vsel %vm200_vm1, %v194_v5, -inf  ;;  %v226_v14 = vsel %vm200_vm1, %v194_v5, 0.0 }
  0x44   : > { %203 = vmax.xlane.f32.xlu0 %v201_v7 }
  0x62   : > { %227 = vadd.xlane.f32.xlu1 %v226_v14 }
  0xbd   : > { %v235_v18 = vpop.permute.xlu1 %234 }
  0xbe   : > { %vm236_vm3 = vcmp.eq.s32.totalorder %v199_v6, %v235_v18 }
  0xbf   : > { %v237_v20 = vsel %vm236_vm3, %v194_v5, 0.0 }
  0xd1   : > { %v204_v11 = vpop.xlane.xlu0 %203 }
  0xd2   : > { %v205_v12 = vmax.f32 %v202_v10, %v204_v11 }
  0xd4   : > { %v207_v13 = vsub.f32 %v202_v10, %v205_v12  ;;  %224 = vst.msk [vmem:[#allocation2] sm:$0xff] %vm222_vm2, %v205_v12  ;;  %213 = vperm.xlu0 %447, %v205_v12  }
  0xd6   : > { %v208_v24 = vmul.f32 1.442695, %v207_v13 }
  0xdb   : > { %v246_v35 = vld [vmem:[#allocation2] sm:$0xff] (!%p375_p7) }
  0xef   : > { %v228_v22 = vpop.xlane.xlu1 %227 }
  0xf0   : > { %v229_v23 = vadd.f32 %v228_v22, %v225_v21 }
  0xf2   : > { %230 = vst.msk [vmem:[#allocation4] sm:$0xff] %vm222_vm2, %v229_v23 }
  0xf9   : > { %v255_v39 = vld [vmem:[#allocation4] sm:$0xff] (!%p375_p7) }
 0x153   : > { %v214_v15 = vpop.permute.xlu0 %213 }
 0x154   : > { %v216_v16 = vsub.f32 %v201_v7, %v214_v15 }
 0x156   : > { %v217_v17 = vmul.f32 1.442695, %v216_v16 }
 0x158   : > { %449 = vpow2.f32 %v217_v17 }
 0x159   : > { %451 = vpow2.f32 %v208_v24 }
 0x162   : > { %v450_v19 = vpop.eup %449 }
 0x163   : > { %219 = vadd.xlane.f32.xlu1 %v450_v19  ;;  %v452_v25 = vpop.eup %451 }
 0x164   : > { %v210_v27 = vmul.f32 %v452_v25, %v206_v26 }
 0x167   : > { %238 = vadd.xlane.f32.xlu1 %v237_v20 }
 0x1f0   : > { %v220_v28 = vpop.xlane.xlu1 %219 }
 0x1f1   : > { %v221_v29 = vadd.f32 %v220_v28, %v210_v27  ;;  %245 = sbr.rel (%p375_p7) target bundleno = 738 (0x2e2), region = 40 }
 0x1f3   : > { %223 = vst.msk [vmem:[#allocation3] sm:$0xff] %vm222_vm2, %v221_v29 }
 0x1f4   : > { %v239_v31 = vpop.xlane.xlu1 %238 }
 0x1f5   : > { %v240_v32 = vadd.f32 %v239_v31, %v232_v30 }
 0x1f7   : > { %241 = vst.msk [vmem:[#allocation5] sm:$0xff] %vm222_vm2, %v240_v32 }
 0x1fa   : > { %v247_v33 = vld [vmem:[#allocation3] sm:$0xff] }
 0x1fb   : > { %453 = vlog2.f32 %v247_v33 }
 0x1fe   : > { %v251_v37 = vld [vmem:[#allocation5] sm:$0xff] }
 0x205   : > { %v454_v34 = vpop.eup %453 }
 0x206   : > { %v249_v36 = vmul.f32 0.6931472, %v454_v34 }
 0x208   : > { %v250_v38 = vadd.f32 %v249_v36, %v246_v35 }
 0x20a   : > { %v252_v40 = vsub.f32 %v250_v38, %v251_v37  ;;  %v254_v41 = vmul.f32 160.0, %v250_v38 }
 0x20c   : > { %v253_v43 = vmul.f32 0.9, %v252_v40  ;;  %v256_v44 = vsub.f32 %v254_v41, %v255_v39 }
 0x20e   : > { %v257_v45 = vmul.f32 0.000625, %v256_v44 }
 0x210   : > { %v258_v46 = vadd.f32 %v257_v45, %v253_v43 }
 0x212   : > { %v265_v47 = vsel %vm264_vm4, %v258_v46, 0.0 }
 0x213   : > { %v266_v48 = vsel %vm222_vm2, %v265_v47, 0.0 }
 0x214   : > { %267 = vadd.xlane.f32.xlu0 %v266_v48 }
 0x2a1   : > { %v268_v49 = vpop.xlane.xlu0 %267 }
 0x2a2   : > { %v269_v50 = vrot.slane %v268_v49, 4 }
 0x2a4   : > { %v270_v51 = vadd.f32 %v269_v50, %v268_v49 }
 0x2a6   : > { %v271_v52 = vrot.slane %v270_v51, 2 }
 0x2a8   : > { %v272_v53 = vadd.f32 %v271_v52, %v270_v51 }
 0x2aa   : > { %v273_v54 = vrot.slane %v272_v53, 1 }
 0x2ac   : > { %v274_v55 = vadd.f32 %v273_v54, %v272_v53 }
 0x2ae   : > { %380 = vpush %v274_v55 }
 0x2df   : > { %s381_s12 = spop %380 }
 0x2e0   : > { %v276_v56 = vstv %s381_s12 }
 0x2e1   : > { %277 = vst [vmem:[#allocation9] sm:$0xff] %v276_v56 }
 0x2e2 PF: > { %p704_p9 = scmp.eq.s32.totalorder %s365_s15, 1  ;;  %s571_s30 = smov [#allocation9]  }
 0x2e3   : > { %s287_s3 = sshll.u32 %s571_s30, 4  ;;  %s288_s3 = int_to_ptr.vmem [resolvable:$true] %s287_s3 }
 0x2e4   : > { %s485_s4 = scalar_lea.vmem %s288_s3, 128  ;;  %p492_p12 = scmp.lt.s32.totalorder %s288_s3, %s288_s3 }
 0x2e5   : > { %p486_p11 = scmp.ne.s32.totalorder %s288_s3, %s485_s4  ;;  %p493_p0 = scmp.lt.s32.totalorder %s485_s4, %s485_s4 }
 0x2e7   : > { %p487_p6 = pnand %p486_p11, %p704_p9  ;;  %p494_p2 = por %p493_p0, %p492_p12 }
 0x2e9   : > { %p488_p8 = pneg %p487_p6 }
 0x2eb   : > { %p495_p3 = pnand %p494_p2, %p488_p8 }
 0x2ed   : > { %498 = shalt.err (!%p495_p3)
}
 0x2ee   : > { %s499_s15 = scalar_lea.hbm %s750_s2, 128 }
 0x2ef   : > { %p500_p4 = scmp.ne.s32.totalorder %s750_s2, %s499_s15  ;;  %p505_p13 = scmp.lt.u32.totalorder %s499_s15, %s750_s2 }
 0x2f1   : > { %p501_p1 = pnand %p500_p4, %p704_p9 }
 0x2f3   : > { %p502_p5 = pneg %p501_p1 }
 0x2f5   : > { %p507_p10 = pnand %p505_p13, %p502_p5 }
 0x2f7   : > { %510 = shalt.err (!%p507_p10)
}
 0x2f8   : > { %385 = dma.vmem_to_hbm [thread:$0]  (%p704_p9), %s288_s3, 128, %s750_s2, [#allocation8]  }
 0x2f9   : > { %540 = dma.done.wait (%p704_p9), [#allocation8], 128  }
 0x2fa   : > { %542 = vsyncadd (%p704_p9), [#allocation8], 4294967168 }
 0x2fb PF: > { %s16_s14 = sadd.s32 1, %s565_s14   ;;  %s757_s9 = smov %s549_s10 }
 0x2fc   : > { %p13_p7 = scmp.ge.s32.totalorder %s16_s14, 4   ;;  %s758_s10 = smov %s553_s11 }
 0x2fd   : > { %s759_s11 = smov %s638_s21  ;;  %s760_s12 = smov %s561_s13 }
 0x2fe   : > { %s761_s13 = smov %s763_s16  ;;  %15 = sbr.rel (!%p13_p7) target bundleno = 5 (0x5), region = 77 }
 0x305   :  { %300 = vsyncpa [#allocation7], 1 }
 0x306   :  { %302 = vsyncpa [#allocation7 + $0x1], 1 }
 0x307   :  { %303 = vsyncpa [#allocation8], 1 }
 0x308   :  { %305 = vsyncpa [#allocation8 + $0x1], 1 }

</bundles_post_ra>
